<compile_context>
chip_gen: v5e
topology: v5e:2x2
jax: 0.10.0
libtpu: 0.0.40
codegen_flags: <defaults>
</compile_context>

<pallas_src>
import jax
import jax.numpy as jnp
from jax import lax
from jax.experimental import pallas as pl
from jax.experimental.pallas import tpu as pltpu


# --------------------------------------------------------------------------
# Kernels
# --------------------------------------------------------------------------
def _resident_kernel(x_ref, w_ref, b_ref, wf_ref, bf_ref, o_ref):
    """Grid = (batch_tiles,).  All layer weights resident in VMEM.

    x_ref : [TB, H]      input tile (original dtype)
    w_ref : [L, H, H]    bf16 layer weights, [in, out] layout (resident)
    b_ref : [L, H]       f32 layer biases   (resident)
    wf_ref: [1, H]       f32 final projection weight
    bf_ref: [1]          f32 final projection bias (SMEM scalar)
    o_ref : [TB, 1]      output logits
    """
    num_layers = w_ref.shape[0]

    def layer_body(l, h):
        # y = h @ W_l + b_l ; ReLU.  Native [M,K]x[K,N] MXU matmul, f32 acc.
        y = jnp.dot(h.astype(jnp.bfloat16), w_ref[l],
                    preferred_element_type=jnp.float32)
        return jnp.maximum(y + b_ref[l], 0.0)

    h = lax.fori_loop(0, num_layers, layer_body,
                      x_ref[...].astype(jnp.float32), unroll=True)

    # Final [H] -> [1] projection: VPU multiply + lane reduction.
    logit = jnp.sum(h * wf_ref[...], axis=-1, keepdims=True)
    o_ref[...] = (logit + bf_ref[0]).astype(o_ref.dtype)


def _streamed_kernel(x_ref, w_ref, b_ref, wf_ref, bf_ref, o_ref, h_ref):
    """Grid = (batch_tiles, num_layers).  Per-layer weights streamed from HBM.

    x_ref : [TB, H]    input tile (resident across the layer axis)
    w_ref : [1, H, H]  bf16 layer weight, [in, out] layout (streamed)
    b_ref : [1, H]     f32 layer bias (streamed)
    wf_ref: [1, H]     f32 final projection weight
    bf_ref: [1]        f32 final projection bias (SMEM scalar)
    o_ref : [TB, 1]    output logits (written at the last layer only)
    h_ref : [TB, H]    f32 VMEM scratch holding the running activations
    """
    l = pl.program_id(1)

    @pl.when(l == 0)
    def _init():
        h_ref[...] = x_ref[...].astype(jnp.float32)

    y = jnp.dot(h_ref[...].astype(jnp.bfloat16), w_ref[0],
                preferred_element_type=jnp.float32)
    h_ref[...] = jnp.maximum(y + b_ref[...], 0.0)

    @pl.when(l == pl.num_programs(1) - 1)
    def _finalize():
        logit = jnp.sum(h_ref[...] * wf_ref[...], axis=-1, keepdims=True)
        o_ref[...] = (logit + bf_ref[0]).astype(o_ref.dtype)


def _final_only_kernel(x_ref, wf_ref, bf_ref, o_ref):
    """num_layers == 0: bare Linear(H, 1)."""
    h = x_ref[...].astype(jnp.float32)
    logit = jnp.sum(h * wf_ref[...], axis=-1, keepdims=True)
    o_ref[...] = (logit + bf_ref[0]).astype(o_ref.dtype)


# --------------------------------------------------------------------------
# Parameter prep & wrapper
# --------------------------------------------------------------------------
def prepare_params(layer_ws, layer_bs, final_w, final_b):
    """One-time (model-load) parameter prep.

    Hidden-layer weights: PyTorch [out, in] -> MXU-native [in, out], bf16.
    Biases and the tiny final projection stay in f32.
    """
    return (
        jnp.transpose(layer_ws, (0, 2, 1)).astype(jnp.bfloat16),  # [L, H, H] (in,out)
        layer_bs.astype(jnp.float32),                             # [L, H]
        final_w.reshape(1, -1).astype(jnp.float32),               # [1, H]
        final_b.reshape(1).astype(jnp.float32),                   # [1]
    )


def _vmem_capacity_bytes():
    try:
        return int(pltpu.get_tpu_info().vmem_capacity_bytes)
    except Exception:
        return 64 << 20  # conservative: v7x per-TensorCore VMEM


def language_detector_forward(x, params, *, force_streamed=False):
    """x: [B, H] (any float dtype); params from prepare_params()."""
    layer_ws_t, layer_bs, final_w, final_b = params
    B, H = x.shape
    L = layer_ws_t.shape[0]
    itemsize = jnp.dtype(x.dtype).itemsize
    vmem_cap = _vmem_capacity_bytes()

    # Batch tile: >= 256/512 amortizes the weight stream on all generations
    # (v7x needs ~384-512, v6e could profitably go to ~1024 for huge B).
    TB = B if B <= 512 else 512
    nb = pl.cdiv(B, TB)

    out_shape = jax.ShapeDtypeStruct((B, 1), x.dtype)

    # ---------------- num_layers == 0: bare final Linear --------------------
    if L == 0:
        need = 2 * TB * H * itemsize + 2 * H * 4 + 2 * TB * 4 + 4 * TB * H * 4
        vmem_limit = int(max(16 << 20, min(vmem_cap - (4 << 20), need + (8 << 20))))
        return pl.pallas_call(
            _final_only_kernel,
            out_shape=out_shape,
            grid_spec=pltpu.PrefetchScalarGridSpec(
                num_scalar_prefetch=0,
                grid=(nb,),
                in_specs=[
                    pl.BlockSpec((TB, H), lambda bi: (bi, 0)),          # x
                    pl.BlockSpec((1, H), lambda bi: (0, 0)),            # final W
                    pl.BlockSpec(memory_space=pltpu.MemorySpace.SMEM),  # final b
                ],
                out_specs=pl.BlockSpec((TB, 1), lambda bi: (bi, 0)),
            ),
            compiler_params=pltpu.CompilerParams(
                dimension_semantics=("parallel",),
                vmem_limit_bytes=vmem_limit),
            cost_estimate=pl.CostEstimate(
                flops=2 * B * H, transcendentals=0,
                bytes_accessed=B * H * itemsize + H * 4 + 4 + B * itemsize),
        )(x, final_w, final_b)

    # ---------------- resident-weight vs streamed decision ------------------
    w_bytes = L * H * H * 2        # bf16 hidden weights
    b_bytes = L * H * 4
    # Conservative estimate (assume double-buffered inputs + elementwise temps).
    resident_need = (2 * w_bytes + 2 * b_bytes + 2 * TB * H * itemsize
                     + 2 * H * 4 + 2 * TB * 4 + 6 * TB * H * 4)
    use_resident = (not force_streamed) and resident_need <= int(0.6 * vmem_cap)

    if use_resident:
        vmem_limit = int(max(16 << 20,
                             min(vmem_cap - (4 << 20), resident_need + (8 << 20))))
        cost = pl.CostEstimate(
            flops=2 * B * H * H * L + 2 * B * H,
            transcendentals=0,
            bytes_accessed=(B * H * itemsize + w_bytes + b_bytes
                            + H * 4 + 4 + B * itemsize),
        )
        return pl.pallas_call(
            _resident_kernel,
            out_shape=out_shape,
            grid_spec=pltpu.PrefetchScalarGridSpec(
                num_scalar_prefetch=0,
                grid=(nb,),
                in_specs=[
                    pl.BlockSpec((TB, H), lambda bi: (bi, 0)),          # x
                    pl.BlockSpec((L, H, H), lambda bi: (0, 0, 0)),      # all layer W (resident)
                    pl.BlockSpec((L, H), lambda bi: (0, 0)),            # all layer b (resident)
                    pl.BlockSpec((1, H), lambda bi: (0, 0)),            # final W
                    pl.BlockSpec(memory_space=pltpu.MemorySpace.SMEM),  # final b scalar
                ],
                out_specs=pl.BlockSpec((TB, 1), lambda bi: (bi, 0)),
            ),
            compiler_params=pltpu.CompilerParams(
                dimension_semantics=("parallel",),
                vmem_limit_bytes=vmem_limit),
            cost_estimate=cost,
        )(x, layer_ws_t, layer_bs, final_w, final_b)

    # ---------------- streamed path (weights too big to keep resident) ------
    streamed_need = (2 * 2 * H * H + 2 * H * 4 + 2 * TB * H * itemsize
                     + 2 * H * 4 + 2 * TB * 4 + TB * H * 4 + 6 * TB * H * 4)
    vmem_limit = int(max(16 << 20,
                         min(vmem_cap - (4 << 20), streamed_need + (8 << 20))))
    cost = pl.CostEstimate(
        flops=2 * B * H * H * L + 2 * B * H,
        transcendentals=0,
        bytes_accessed=(B * H * itemsize + nb * w_bytes + nb * b_bytes
                        + H * 4 + 4 + B * itemsize),
    )
    return pl.pallas_call(
        _streamed_kernel,
        out_shape=out_shape,
        grid_spec=pltpu.PrefetchScalarGridSpec(
            num_scalar_prefetch=0,
            grid=(nb, L),
            in_specs=[
                pl.BlockSpec((TB, H), lambda bi, l: (bi, 0)),       # x
                pl.BlockSpec((1, H, H), lambda bi, l: (l, 0, 0)),   # layer W (streamed)
                pl.BlockSpec((1, H), lambda bi, l: (l, 0)),         # layer b (streamed)
                pl.BlockSpec((1, H), lambda bi, l: (0, 0)),         # final W
                pl.BlockSpec(memory_space=pltpu.MemorySpace.SMEM),  # final b scalar
            ],
            out_specs=pl.BlockSpec((TB, 1), lambda bi, l: (bi, 0)),
            scratch_shapes=[pltpu.VMEM((TB, H), jnp.float32)],
        ),
        compiler_params=pltpu.CompilerParams(
            dimension_semantics=("parallel", "arbitrary"),
            vmem_limit_bytes=vmem_limit),
        cost_estimate=cost,
    )(x, layer_ws_t, layer_bs, final_w, final_b)


# --------------------------------------------------------------------------
# References & smoke test
# --------------------------------------------------------------------------
def _reference_forward_f32(x, layer_ws, layer_bs, final_w, final_b):
    h = x.astype(jnp.float32)
    for i in range(layer_ws.shape[0]):
        h = jnp.maximum(h @ layer_ws[i].T + layer_bs[i], 0.0)
    return (h @ final_w.T + final_b).astype(x.dtype)


def _reference_forward_bf16(x, layer_ws, layer_bs, final_w, final_b):
    # Mirrors the kernel numerics: bf16 weights/activations into the MXU,
    # f32 accumulation, f32 bias/ReLU, f32 final projection.
    h = x.astype(jnp.float32)
    for i in range(layer_ws.shape[0]):
        w = layer_ws[i].T.astype(jnp.bfloat16)  # [in, out]
        y = jnp.dot(h.astype(jnp.bfloat16), w, preferred_element_type=jnp.float32)
        h = jnp.maximum(y + layer_bs[i], 0.0)
    return (jnp.sum(h * final_w.reshape(1, -1), axis=-1, keepdims=True)
            + final_b).astype(x.dtype)


if __name__ == "__main__":
    num_layers = 2
    hidden_size = 32
    batch = 8

    key = jax.random.PRNGKey(0)
    k_x, k_w, k_b, k_wf, k_bf = jax.random.split(key, 5)

    x = jax.random.normal(k_x, (batch, hidden_size), dtype=jnp.float32)

    # PyTorch-style uniform(-1/sqrt(in), 1/sqrt(in)) init, [out, in] layout.
    bound = 1.0 / (hidden_size ** 0.5)
    layer_ws = jax.random.uniform(
        k_w, (num_layers, hidden_size, hidden_size), minval=-bound, maxval=bound,
        dtype=jnp.float32)
    layer_bs = jax.random.uniform(
        k_b, (num_layers, hidden_size), minval=-bound, maxval=bound,
        dtype=jnp.float32)
    final_w = jax.random.uniform(
        k_wf, (1, hidden_size), minval=-bound, maxval=bound, dtype=jnp.float32)
    final_b = jax.random.uniform(
        k_bf, (1,), minval=-bound, maxval=bound, dtype=jnp.float32)

    params = prepare_params(layer_ws, layer_bs, final_w, final_b)

    # Resident-weight path (default for this size).
    out = language_detector_forward(x, params)
    out = jax.block_until_ready(out)

    ref_f32 = _reference_forward_f32(x, layer_ws, layer_bs, final_w, final_b)
    ref_bf16 = _reference_forward_bf16(x, layer_ws, layer_bs, final_w, final_b)

    assert out.shape == (batch, 1)
    assert jnp.allclose(out, ref_bf16, atol=1e-2, rtol=1e-2)
    assert jnp.allclose(out, ref_f32, atol=5e-2, rtol=5e-2)

    # Streamed path (large-model fallback) — exercised here at small shapes.
    out_s = jax.block_until_ready(
        language_detector_forward(x, params, force_streamed=True))
    assert jnp.allclose(out_s, ref_bf16, atol=1e-2, rtol=1e-2)

    # num_layers == 0 path (bare final Linear).
    params0 = prepare_params(
        jnp.zeros((0, hidden_size, hidden_size), jnp.float32),
        jnp.zeros((0, hidden_size), jnp.float32), final_w, final_b)
    out0 = jax.block_until_ready(language_detector_forward(x, params0))
    ref0 = _reference_forward_f32(
        x, jnp.zeros((0, hidden_size, hidden_size), jnp.float32),
        jnp.zeros((0, hidden_size), jnp.float32), final_w, final_b)
    assert jnp.allclose(out0, ref0, atol=1e-3, rtol=1e-3)

    print("KERNEL_OK")
</pallas_src>

<mosaic_0001>
module attributes {stable_mosaic.version = 11 : i64} {
  func.func @_resident_kernel(%arg0: i32, %arg1: memref<8x32xf32, #tpu.memory_space<vmem>>, %arg2: memref<2x32x32xbf16, #tpu.memory_space<vmem>>, %arg3: memref<2x32xf32, #tpu.memory_space<vmem>>, %arg4: memref<1x32xf32, #tpu.memory_space<vmem>>, %arg5: memref<1xf32, #tpu.memory_space<smem>>, %arg6: memref<8x1xf32, #tpu.memory_space<vmem>>) attributes {dimension_semantics = [#tpu.dimension_semantics<parallel>], iteration_bounds = array<i64: 1>, scalar_prefetch = 0 : i64, scratch_operands = 0 : i64, tpu.core_type = #tpu.core_type<tc>, window_params = [{transform_indices = @transform_0, window_bounds = array<i64: 8, 32>}, {pipeline_mode = #tpu.pipeline_mode<synchronous>, transform_indices = @transform_1, window_bounds = array<i64: 2, 32, 32>}, {pipeline_mode = #tpu.pipeline_mode<synchronous>, transform_indices = @transform_2, window_bounds = array<i64: 2, 32>}, {pipeline_mode = #tpu.pipeline_mode<synchronous>, transform_indices = @transform_3, window_bounds = array<i64: 1, 32>}, {transform_indices = @transform_4, window_bounds = array<i64: 1>}, {transform_indices = @transform_5, window_bounds = array<i64: 8, 1>}]} {
    %c0 = arith.constant 0 : index
    %c0_0 = arith.constant 0 : index
    %0 = vector.load %arg1[%c0, %c0_0] : memref<8x32xf32, #tpu.memory_space<vmem>>, vector<8x32xf32>
    %c0_i32 = arith.constant 0 : i32
    %1 = arith.truncf %0 : vector<8x32xf32> to vector<8x32xbf16>
    %2 = arith.index_cast %c0_i32 : i32 to index
    %c0_1 = arith.constant 0 : index
    %c0_2 = arith.constant 0 : index
    %3 = vector.load %arg2[%2, %c0_1, %c0_2] : memref<2x32x32xbf16, #tpu.memory_space<vmem>>, vector<1x32x32xbf16>
    %4 = vector.shape_cast %3 : vector<1x32x32xbf16> to vector<32x32xbf16>
    %cst = arith.constant dense<0.000000e+00> : vector<8x32xf32>
    %5 = tpu.matmul %1, %4, %cst {dimension_numbers = #tpu.dot_dimension_numbers<[1], [0], [0], [1], [0, 0, 1, 1], [], []>} : vector<8x32xbf16>, vector<32x32xbf16>, vector<8x32xf32> -> vector<8x32xf32>
    %6 = arith.index_cast %c0_i32 : i32 to index
    %c0_3 = arith.constant 0 : index
    %7 = vector.load %arg3[%6, %c0_3] : memref<2x32xf32, #tpu.memory_space<vmem>>, vector<1x32xf32>
    %8 = vector.shape_cast %7 : vector<1x32xf32> to vector<32xf32>
    %9 = vector.shape_cast %8 : vector<32xf32> to vector<1x32xf32>
    %10 = vector.broadcast %9 : vector<1x32xf32> to vector<8x32xf32>
    %11 = arith.addf %5, %10 : vector<8x32xf32>
    %cst_4 = arith.constant 0.000000e+00 : f32
    %12 = vector.broadcast %cst_4 : f32 to vector<8x32xf32>
    %13 = arith.maximumf %11, %12 : vector<8x32xf32>
    %c1_i32 = arith.constant 1 : i32
    %14 = arith.truncf %13 : vector<8x32xf32> to vector<8x32xbf16>
    %15 = arith.index_cast %c1_i32 : i32 to index
    %c0_5 = arith.constant 0 : index
    %c0_6 = arith.constant 0 : index
    %16 = vector.load %arg2[%15, %c0_5, %c0_6] : memref<2x32x32xbf16, #tpu.memory_space<vmem>>, vector<1x32x32xbf16>
    %17 = vector.shape_cast %16 : vector<1x32x32xbf16> to vector<32x32xbf16>
    %cst_7 = arith.constant dense<0.000000e+00> : vector<8x32xf32>
    %18 = tpu.matmul %14, %17, %cst_7 {dimension_numbers = #tpu.dot_dimension_numbers<[1], [0], [0], [1], [0, 0, 1, 1], [], []>} : vector<8x32xbf16>, vector<32x32xbf16>, vector<8x32xf32> -> vector<8x32xf32>
    %19 = arith.index_cast %c1_i32 : i32 to index
    %c0_8 = arith.constant 0 : index
    %20 = vector.load %arg3[%19, %c0_8] : memref<2x32xf32, #tpu.memory_space<vmem>>, vector<1x32xf32>
    %21 = vector.shape_cast %20 : vector<1x32xf32> to vector<32xf32>
    %22 = vector.shape_cast %21 : vector<32xf32> to vector<1x32xf32>
    %23 = vector.broadcast %22 : vector<1x32xf32> to vector<8x32xf32>
    %24 = arith.addf %18, %23 : vector<8x32xf32>
    %cst_9 = arith.constant 0.000000e+00 : f32
    %25 = vector.broadcast %cst_9 : f32 to vector<8x32xf32>
    %26 = arith.maximumf %24, %25 : vector<8x32xf32>
    %c2_i32 = arith.constant 2 : i32
    %c0_10 = arith.constant 0 : index
    %c0_11 = arith.constant 0 : index
    %27 = vector.load %arg4[%c0_10, %c0_11] : memref<1x32xf32, #tpu.memory_space<vmem>>, vector<1x32xf32>
    %28 = vector.broadcast %27 : vector<1x32xf32> to vector<8x32xf32>
    %29 = arith.mulf %26, %28 : vector<8x32xf32>
    %cst_12 = arith.constant dense<0.000000e+00> : vector<8xf32>
    %30 = vector.multi_reduction <add>, %29, %cst_12 [1] : vector<8x32xf32> to vector<8xf32>
    %31 = vector.shape_cast %30 : vector<8xf32> to vector<8x1xf32>
    %c0_13 = arith.constant 0 : index
    %32 = memref.load %arg5[%c0_13] : memref<1xf32, #tpu.memory_space<smem>>
    %33 = vector.broadcast %32 : f32 to vector<8x1xf32>
    %34 = arith.addf %31, %33 : vector<8x1xf32>
    %c0_14 = arith.constant 0 : index
    %c0_15 = arith.constant 0 : index
    %35 = vector.load %arg6[%c0_14, %c0_15] : memref<8x1xf32, #tpu.memory_space<vmem>>, vector<8x1xf32>
    tpu.vector_store %arg6[%c0_14, %c0_15], %34 {strides = array<i32>} : memref<8x1xf32, #tpu.memory_space<vmem>>, vector<8x1xf32>,
    return
  }
  func.func @transform_0(%arg0: i32) -> (i32, i32) {
    %c0_i32 = arith.constant 0 : i32
    %c0_i32_0 = arith.constant 0 : i32
    return %arg0, %c0_i32 : i32, i32
  }
  func.func @transform_1(%arg0: i32) -> (i32, i32, i32) {
    %c0_i32 = arith.constant 0 : i32
    %c0_i32_0 = arith.constant 0 : i32
    %c0_i32_1 = arith.constant 0 : i32
    %c0_i32_2 = arith.constant 0 : i32
    return %c0_i32, %c0_i32_0, %c0_i32_1 : i32, i32, i32
  }
  func.func @transform_2(%arg0: i32) -> (i32, i32) {
    %c0_i32 = arith.constant 0 : i32
    %c0_i32_0 = arith.constant 0 : i32
    %c0_i32_1 = arith.constant 0 : i32
    return %c0_i32, %c0_i32_0 : i32, i32
  }
  func.func @transform_3(%arg0: i32) -> (i32, i32) {
    %c0_i32 = arith.constant 0 : i32
    %c0_i32_0 = arith.constant 0 : i32
    %c0_i32_1 = arith.constant 0 : i32
    return %c0_i32, %c0_i32_0 : i32, i32
  }
  func.func @transform_4(%arg0: i32) -> i32 {
    %c0_i32 = arith.constant 0 : i32
    %c0_i32_0 = arith.constant 0 : i32
    return %c0_i32 : i32
  }
  func.func @transform_5(%arg0: i32) -> (i32, i32) {
    %c0_i32 = arith.constant 0 : i32
    %c0_i32_0 = arith.constant 0 : i32
    return %arg0, %c0_i32 : i32, i32
  }
}

</mosaic_0001>

<bundles_post_ra>
// kernel: tpu_custom_call.1
= control target key start
LH: loop header
LB: loop body
LE: loop exit
PB: predicated region body
PF: predicated region fallthrough
CT: control target
= control target key end

     0   :  { %11 = vsyncpa [#allocation4], 0  ;;  %s285_s0 = inlined_call_operand.hbm [shape: f32[8,32], index: 0, kind: input, shape index: {}]   ;;  %s286_s1 = inlined_call_operand.hbm [shape: bf16[2,32,32], index: 1, kind: input, shape index: {}]   ;;  %s287_s2 = inlined_call_operand.vmem [shape: f32[2,32], index: 2, kind: input, shape index: {}]   ;;  %s288_s3 = inlined_call_operand.vmem [shape: f32[1,32], index: 3, kind: input, shape index: {}]   ;;  %s289_s4 = inlined_call_operand.<no memory space> [shape: f32[1], index: 4, kind: input, shape index: {}]   ;;  %s290_s5 = inlined_call_operand.vmem [shape: f32[8,1], index: 5, kind: output, shape index: {}]  }
   0x1   :  { %s18_s20 = sshll.u32 %s285_s0, 4  ;;  %s19_s20 = int_to_ptr.hbm [resolvable:$true] %s18_s20 }
   0x2   :  { %12 = vsyncpa [#allocation6], 0  ;;  %s227_s21 = smov [#allocation3]   ;;  %s28_s25 = sshll.u32 %s286_s1, 4  ;;  %s29_s25 = int_to_ptr.hbm [resolvable:$true] %s28_s25 }
   0x3   :  { %s20_s22 = sshll.u32 %s227_s21, 4  ;;  %s228_s26 = smov [#allocation5]   ;;  %s21_s22 = int_to_ptr.vmem [resolvable:$true] %s20_s22 }
   0x4   :  { %23 = dma.hbm_to_vmem [thread:$0]  %s19_s20, 128, %s21_s22, [#allocation4]  }
   0x5   :  { %s30_s27 = sshll.u32 %s228_s26, 4  ;;  %s229_s28 = smov 64   ;;  %s31_s27 = int_to_ptr.vmem [resolvable:$true] %s30_s27 }
   0x6   :  { %s230_s29 = smov 4  }
   0x7   :  { %36 = dma.hbm_to_vmem [thread:$0]  %s29_s25, 512, %s31_s27, [#allocation6], %s229_s28, %s229_s28, %s230_s29  }
   0x8   :  { %223 = dma.done.wait [#allocation4], 128  }
   0x9   :  { %224 = vsyncadd [#allocation4], 4294967168 }
   0xa   :  { %225 = dma.done.wait [#allocation6], 512  }
   0xb   :  { %226 = vsyncadd [#allocation6], 4294966784  ;;  %v165_v0 = vld [vmem:[#allocation5 + $0x8] sm:$0xff]  ;;  %v164_v1 = vld [vmem:[#allocation5] sm:$0xff]  ;;  %vm72_vm0 = vcmask 261120   ;;  %v136_v20 = vstv %s289_s4  ;;  %vm138_vm1 = vcmask 7168  }
   0xc   :  { %82 = vmatpush.bf16.msra.mxu0 %v165_v0  ;;  %v52_v2 = vld [vmem:[#allocation3] sm:$0xff]  ;;  %v166_v5 = vld [vmem:[#allocation5 + $0x10] sm:$0xff] }
   0xd   :  { %v53_v3 = vpack.c.bf16 %v52_v2, %v52_v2  ;;  %v167_v4 = vld [vmem:[#allocation5 + $0x18] sm:$0xff] }
   0xe   :  { %119 = vmatpush.bf16.msra.mxu1 %v167_v4  ;;  %v172_v6 = vld [vmem:[%s287_s2] ss:$0 sm:$0xff]  ;;  %v173_v12 = vld [vmem:[%s287_s2 + $0x1] ss:$0 sm:$0xff] }
   0xf   :  { %v174_v15 = vld [vmem:[%s288_s3] ss:$0 sm:$0xff] }
  0x10   :  { %83 = vmatpush.bf16.msra.mxu0 %v164_v1 }
  0x12   :  { %120 = vmatpush.bf16.msra.mxu1 %v166_v5 }
  0x13   :  { %154 = vmatmul.msk.bf16.vlgmr.msra.gmra.mxu0 %vm72_vm0, %v53_v3 }
  0x90   :  { %v85_v7 = vpop.f32.mrf.mxu0 }
  0x91   :  { %v86_v8 = vadd.f32 %v172_v6, %v85_v7 }
  0x93   :  { %v89_v9 = vmax.f32 %v86_v8, 0.0 }
  0x95   :  { %v90_v10 = vpack.c.bf16 %v89_v9, %v89_v9 }
  0x97   :  { %163 = vmatmul.msk.bf16.vlgmr.msra.gmra.mxu1 %vm72_vm0, %v90_v10 }
  0x98   :  { %v87_v11 = vpop.f32.mrf.mxu0 }
 0x114   :  { %v122_v13 = vpop.f32.mrf.mxu1 }
 0x115   :  { %v123_v14 = vadd.f32 %v173_v12, %v122_v13 }
 0x117   :  { %v126_v16 = vmax.f32 %v123_v14, 0.0 }
 0x119   :  { %v131_v17 = vmul.f32 %v174_v15, %v126_v16 }
 0x11b   :  { %v132_v18 = vsel %vm72_vm0, %v131_v17, 0.0 }
 0x11c   :  { %v124_v19 = vpop.f32.mrf.mxu1  ;;  %133 = vadd.xlane.f32.xlu0 %v132_v18 }
 0x18f   :  { %v134_v21 = vpop.xlane.xlu0 %133 }
 0x190   :  { %v137_v22 = vadd.f32 %v136_v20, %v134_v21 }
 0x192   :  { %139 = vst.msk [vmem:[%s290_s5] sm:$0xff] %vm138_vm1, %v137_v22 }
 0x193   :  { %144 = vsyncpa [#allocation4], 1 }
 0x194   :  { %145 = vsyncpa [#allocation6], 1 }

</bundles_post_ra>
